<compile_context>
chip_gen: v7x
topology: tpu7x:2x2x1
jax: 0.10.0
libtpu: 0.0.40
codegen_flags: <defaults>
</compile_context>

<pallas_src>
import functools
import math
from typing import NamedTuple

import jax
import jax.numpy as jnp
from jax.experimental import pallas as pl
from jax.experimental.pallas import tpu as pltpu


# --------------------------------------------------------------------------- #
# Packing / init (analogue of register_buffer in the PyTorch module)
# --------------------------------------------------------------------------- #

def _round_up(x: int, m: int) -> int:
    return (x + m - 1) // m * m


def _sublane_pack(dtype) -> int:
    # Rows per 32-bit sublane word: 8 for f32, 16 for bf16, 32 for int8/fp8.
    return 32 // jnp.dtype(dtype).itemsize


class PackedRandomMatrices(NamedTuple):
    m_cat: jax.Array   # [d0_pad + d1_pad, N_pad]; rows [:d0_pad] hold M0 * N**-0.5
    d0: int
    d1: int
    d0_pad: int
    d1_pad: int
    N: int
    N_pad: int


def pack_random_matrices(m0, m1, *, weight_dtype=jnp.bfloat16) -> PackedRandomMatrices:
    """One-time init: fold 1/sqrt(N) into M0, pad to sublane/lane boundaries,
    concatenate along K, and store in `weight_dtype` (bf16 by default; pass
    jnp.float32 for exact module numerics, jnp.float8_e4m3fn on v7x)."""
    d0, N = m0.shape
    d1, N1 = m1.shape
    assert N1 == N
    scale = 1.0 / math.pow(float(N), 1.0 / 2.0)   # input_num == 2
    pack = _sublane_pack(weight_dtype)
    d0_pad = _round_up(d0, pack)
    d1_pad = _round_up(d1, pack)
    N_pad = _round_up(N, 128)
    m0p = jnp.zeros((d0_pad, N_pad), jnp.float32).at[:d0, :N].set(
        m0.astype(jnp.float32) * scale)
    m1p = jnp.zeros((d1_pad, N_pad), jnp.float32).at[:d1, :N].set(
        m1.astype(jnp.float32))
    m_cat = jnp.concatenate([m0p, m1p], axis=0).astype(weight_dtype)
    return PackedRandomMatrices(m_cat, d0, d1, d0_pad, d1_pad, N, N_pad)


# --------------------------------------------------------------------------- #
# Generation-aware tiling helpers
# --------------------------------------------------------------------------- #

def _tpu_generation_info():
    """Best-effort (vmem_capacity_bytes, num_tensorcores_per_chip, generation)."""
    gen = 6
    try:
        kind = jax.devices()[0].device_kind.lower()
        if "v7" in kind or "tpu7" in kind or "7x" in kind:
            gen = 7
        elif "v6" in kind:
            gen = 6
        elif "v5" in kind:
            gen = 5
        elif "v4" in kind:
            gen = 4
    except Exception:
        pass
    vmem_cap = 64 * 1024 * 1024 if gen >= 7 else 128 * 1024 * 1024
    try:
        vmem_cap = int(getattr(pltpu.get_tpu_info(), "vmem_capacity_bytes", vmem_cap))
    except Exception:
        pass
    num_cores = 2 if gen >= 7 else 1
    return vmem_cap, num_cores, gen


def _pick_tile(N_pad, K, B_pad, w_itemsize, out_itemsize, budget_bytes, min_steps):
    """Largest 128-multiple lane tile that (a) divides N_pad, (b) keeps the
    double-buffered per-step working set under budget, (c) yields >= min_steps
    grid steps (v7x: keep both TensorCores busy)."""
    L = N_pad // 128
    per_lane = 2 * (K * w_itemsize + B_pad * out_itemsize)   # dbl-buffered W + out
    tn_max = max(128, (budget_bytes // max(per_lane, 1)) // 128 * 128)
    g_min = max(pl.cdiv(N_pad, tn_max), min(min_steps, L))
    g = L
    for cand in range(g_min, L + 1):
        if L % cand == 0:
            g = cand
            break
    return N_pad // g, g


def _pad_cast_2d(x, rows, cols, dtype):
    x = x.astype(dtype)
    if x.shape == (rows, cols):
        return x
    out = jnp.zeros((rows, cols), dtype)
    return out.at[: x.shape[0], : x.shape[1]].set(x)


# --------------------------------------------------------------------------- #
# Kernel + wrapper
# --------------------------------------------------------------------------- #

def _random_layer_kernel(d0_pad, x0_ref, x1_ref, m_ref, o_ref):
    # d0_pad is a multiple of the stored dtype's sublane pack, so these static
    # slices are zero-cost aligned views of the weight tile.
    m0 = m_ref[:d0_pad, :]
    m1 = m_ref[d0_pad:, :]
    r0 = jnp.dot(x0_ref[...], m0, preferred_element_type=jnp.float32)
    r1 = jnp.dot(x1_ref[...], m1, preferred_element_type=jnp.float32)
    o_ref[...] = (r0 * r1).astype(o_ref.dtype)


def random_layer(x0, x1, packed: PackedRandomMatrices, *, tn=None):
    """Fused (x0 @ M0)/sqrt(N) * (x1 @ M1) with the packed weight buffer."""
    B, dx0 = x0.shape
    B1, dx1 = x1.shape
    assert B == B1 and dx0 == packed.d0 and dx1 == packed.d1
    K, N_pad = packed.m_cat.shape
    assert K == packed.d0_pad + packed.d1_pad and N_pad == packed.N_pad

    w_dtype = packed.m_cat.dtype
    out_dtype = x0.dtype

    # Pad B to a sublane multiple, pad feature dims to the packed widths, and
    # cast the activations to the weight dtype ONCE here (not per grid step).
    # Note: narrow weight storage (bf16) also rounds the activations.
    B_pad = _round_up(B, 8)
    x0p = _pad_cast_2d(x0, B_pad, packed.d0_pad, w_dtype)
    x1p = _pad_cast_2d(x1, B_pad, packed.d1_pad, w_dtype)

    vmem_cap, num_cores, gen = _tpu_generation_info()
    if vmem_cap >= 96 * 1024 * 1024:        # v5e / v6e: 128 MiB physical VMEM
        budget = 24 * 1024 * 1024
        vmem_limit = 64 * 1024 * 1024
    else:                                    # v7x: 64 MiB physical VMEM
        budget = 16 * 1024 * 1024
        vmem_limit = 44 * 1024 * 1024

    # v7x has 2 TensorCores: never collapse the parallel grid to a single step.
    min_steps = 2 if (gen >= 7 or num_cores > 1) else 1

    if tn is None:
        tn, g = _pick_tile(N_pad, K, B_pad,
                           jnp.dtype(w_dtype).itemsize,
                           jnp.dtype(out_dtype).itemsize,
                           budget, min_steps)
    else:
        assert tn % 128 == 0 and N_pad % tn == 0
        g = N_pad // tn

    kernel = functools.partial(_random_layer_kernel, packed.d0_pad)

    out = pl.pallas_call(
        kernel,
        out_shape=jax.ShapeDtypeStruct((B_pad, N_pad), out_dtype),
        grid_spec=pltpu.PrefetchScalarGridSpec(
            num_scalar_prefetch=0,
            grid=(g,),
            in_specs=[
                pl.BlockSpec((B_pad, packed.d0_pad), lambda j: (0, 0)),  # x0: resident
                pl.BlockSpec((B_pad, packed.d1_pad), lambda j: (0, 0)),  # x1: resident
                pl.BlockSpec((K, tn), lambda j: (0, j)),                 # packed weights
            ],
            out_specs=pl.BlockSpec((B_pad, tn), lambda j: (0, j)),
        ),
        compiler_params=pltpu.CompilerParams(
            dimension_semantics=("parallel",),
            vmem_limit_bytes=vmem_limit,
        ),
    )(x0p, x1p, packed.m_cat)

    if B_pad != B or N_pad != packed.N:
        out = out[:B, :packed.N]
    return out


# --------------------------------------------------------------------------- #
# Demo / correctness check
# --------------------------------------------------------------------------- #

if __name__ == "__main__":
    key = jax.random.PRNGKey(0)
    k0, k1, k2, k3 = jax.random.split(key, 4)

    B = 8            # batch (callers should batch up: AI grows ~ B/2)
    d0, d1 = 32, 16  # input_size_list = [32, 16]
    N = 256          # output_size

    x0 = jax.random.normal(k0, (B, d0), dtype=jnp.float32)
    x1 = jax.random.normal(k1, (B, d1), dtype=jnp.float32)
    # Deterministic "registered buffers" (randn in the PyTorch __init__).
    m0 = jax.random.normal(k2, (d0, N), dtype=jnp.float32)
    m1 = jax.random.normal(k3, (d1, N), dtype=jnp.float32)

    # Pure-JAX reference (matches the PyTorch forward).
    ref = (x0 @ m0) / math.pow(float(N), 0.5) * (x1 @ m1)

    # 1) Default fast path: bf16 weight storage (halves the dominant HBM weight
    #    stream); MXU accumulates in f32.
    packed_bf16 = pack_random_matrices(m0, m1)            # weight_dtype=bf16 default
    out = random_layer(x0, x1, packed_bf16)
    jax.block_until_ready(out)
    assert out.shape == (B, N)
    assert jnp.allclose(out, ref, atol=0.5, rtol=5e-2)

    # 2) Exact-semantics path: f32 registered buffers (same numerics as the module).
    packed_f32 = pack_random_matrices(m0, m1, weight_dtype=jnp.float32)
    out_f32 = random_layer(x0, x1, packed_f32)
    jax.block_until_ready(out_f32)
    assert out_f32.shape == (B, N)
    assert jnp.allclose(out_f32, ref, atol=1e-4, rtol=1e-4)

    # TODO(synk): fp8(e4m3) weight storage on v7x (pack_random_matrices already
    # supports it via weight_dtype) and an int8 + per-column-scale path on
    # v5e/v6e (scale applied after the dots) for another ~2x on the weight stream.
    print("KERNEL_OK")
</pallas_src>

<mosaic_0001>
module attributes {stable_mosaic.version = 11 : i64} {
  func.func @_random_layer_kernel(%arg0: i32, %arg1: memref<8x32xbf16, #tpu.memory_space<vmem>>, %arg2: memref<8x16xbf16, #tpu.memory_space<vmem>>, %arg3: memref<48x256xbf16, #tpu.memory_space<vmem>>, %arg4: memref<8x256xf32, #tpu.memory_space<vmem>>) attributes {dimension_semantics = [#tpu.dimension_semantics<parallel>], iteration_bounds = array<i64: 1>, scalar_prefetch = 0 : i64, scratch_operands = 0 : i64, tpu.core_type = #tpu.core_type<tc>, window_params = [{pipeline_mode = #tpu.pipeline_mode<synchronous>, transform_indices = @transform_0, window_bounds = array<i64: 8, 32>}, {pipeline_mode = #tpu.pipeline_mode<synchronous>, transform_indices = @transform_1, window_bounds = array<i64: 8, 16>}, {transform_indices = @transform_2, window_bounds = array<i64: 48, 256>}, {transform_indices = @transform_3, window_bounds = array<i64: 8, 256>}]} {
    %c0 = arith.constant 0 : index
    %c0_0 = arith.constant 0 : index
    %0 = vector.load %arg3[%c0, %c0_0] : memref<48x256xbf16, #tpu.memory_space<vmem>>, vector<32x256xbf16>
    %c32 = arith.constant 32 : index
    %c0_1 = arith.constant 0 : index
    %1 = vector.load %arg3[%c32, %c0_1] : memref<48x256xbf16, #tpu.memory_space<vmem>>, vector<16x256xbf16>
    %c0_2 = arith.constant 0 : index
    %c0_3 = arith.constant 0 : index
    %2 = vector.load %arg1[%c0_2, %c0_3] : memref<8x32xbf16, #tpu.memory_space<vmem>>, vector<8x32xbf16>
    %cst = arith.constant dense<0.000000e+00> : vector<8x256xf32>
    %3 = tpu.matmul %2, %0, %cst {dimension_numbers = #tpu.dot_dimension_numbers<[1], [0], [0], [1], [0, 0, 1, 1], [], []>} : vector<8x32xbf16>, vector<32x256xbf16>, vector<8x256xf32> -> vector<8x256xf32>
    %c0_4 = arith.constant 0 : index
    %c0_5 = arith.constant 0 : index
    %4 = vector.load %arg2[%c0_4, %c0_5] : memref<8x16xbf16, #tpu.memory_space<vmem>>, vector<8x16xbf16>
    %cst_6 = arith.constant dense<0.000000e+00> : vector<8x256xf32>
    %5 = tpu.matmul %4, %1, %cst_6 {dimension_numbers = #tpu.dot_dimension_numbers<[1], [0], [0], [1], [0, 0, 1, 1], [], []>} : vector<8x16xbf16>, vector<16x256xbf16>, vector<8x256xf32> -> vector<8x256xf32>
    %6 = arith.mulf %3, %5 : vector<8x256xf32>
    %c0_7 = arith.constant 0 : index
    %c0_8 = arith.constant 0 : index
    %7 = vector.load %arg4[%c0_7, %c0_8] : memref<8x256xf32, #tpu.memory_space<vmem>>, vector<8x256xf32>
    tpu.vector_store %arg4[%c0_7, %c0_8], %6 {strides = array<i32>} : memref<8x256xf32, #tpu.memory_space<vmem>>, vector<8x256xf32>,
    return
  }
  func.func @transform_0(%arg0: i32) -> (i32, i32) {
    %c0_i32 = arith.constant 0 : i32
    %c0_i32_0 = arith.constant 0 : i32
    %c0_i32_1 = arith.constant 0 : i32
    return %c0_i32, %c0_i32_0 : i32, i32
  }
  func.func @transform_1(%arg0: i32) -> (i32, i32) {
    %c0_i32 = arith.constant 0 : i32
    %c0_i32_0 = arith.constant 0 : i32
    %c0_i32_1 = arith.constant 0 : i32
    return %c0_i32, %c0_i32_0 : i32, i32
  }
  func.func @transform_2(%arg0: i32) -> (i32, i32) {
    %c0_i32 = arith.constant 0 : i32
    %c0_i32_0 = arith.constant 0 : i32
    return %c0_i32, %arg0 : i32, i32
  }
  func.func @transform_3(%arg0: i32) -> (i32, i32) {
    %c0_i32 = arith.constant 0 : i32
    %c0_i32_0 = arith.constant 0 : i32
    return %c0_i32, %arg0 : i32, i32
  }
}

</mosaic_0001>

<bundles_post_ra>
// kernel: tpu_custom_call.1
= control target key start
LH: loop header
LB: loop body
LE: loop exit
PB: predicated region body
PF: predicated region fallthrough
CT: control target
= control target key end

     0   :  { %8 = vsyncpa [#allocation3], 0  ;;  %s394_s0 = inlined_call_operand.hbm [shape: bf16[8,32], index: 0, kind: input, shape index: {}]   ;;  %s395_s1 = inlined_call_operand.hbm [shape: bf16[8,16], index: 1, kind: input, shape index: {}]   ;;  %s396_s2 = inlined_call_operand.hbm [shape: bf16[48,256], index: 2, kind: input, shape index: {}]   ;;  %s397_s3 = inlined_call_operand.hbm [shape: f32[8,256], index: 3, kind: output, shape index: {}]  }
   0x1   :  { %9 = vsyncpa [#allocation6], 0 }
   0x2   :  { %10 = vsyncpa [#allocation4], 0  ;;  %s319_s12 = smov [#allocation5]   ;;  %s320_s14 = smov [#allocation2]  }
   0x3   :  { %s27_s13 = sshll.u32 %s319_s12, 4  ;;  %s17_s15 = sshll.u32 %s320_s14, 4  ;;  %s28_s13 = int_to_ptr.vmem [resolvable:$true] %s27_s13  ;;  %s18_s15 = int_to_ptr.vmem [resolvable:$true] %s17_s15 }
   0x4   :  { %s225_s18 = scalar_lea.hbm %s395_s1, 64 }
   0x5   :  { %p226_p0 = scmp.ne.s32.totalorder %s395_s1, %s225_s18  ;;  %p229_p1 = scmp.lt.u32.totalorder %s225_s18, %s395_s1 }
   0x7   :  { %p231_p2 = pnand %p229_p1, %p226_p0 }
   0x9   :  { %234 = shalt.err (!%p231_p2)
}
   0xa   :  { %s235_s23 = scalar_lea.vmem %s28_s13, 64  ;;  %p240_p4 = scmp.lt.s32.totalorder %s28_s13, %s28_s13 }
   0xb   :  { %p236_p3 = scmp.ne.s32.totalorder %s28_s13, %s235_s23  ;;  %p241_p5 = scmp.lt.s32.totalorder %s235_s23, %s235_s23 }
   0xd   :  { %p242_p6 = por %p241_p5, %p240_p4 }
   0xf   :  { %p243_p7 = pnand %p242_p6, %p236_p3 }
  0x11   :  { %246 = shalt.err (!%p243_p7)
}
  0x12   :  { %30 = dma.hbm_to_vmem [thread:$0]  %s395_s1, 64, %s28_s13, [#allocation6]  }
  0x13   :  { %s247_s28 = scalar_lea.hbm %s394_s0, 64 }
  0x14   :  { %p248_p8 = scmp.ne.s32.totalorder %s394_s0, %s247_s28  ;;  %p251_p9 = scmp.lt.u32.totalorder %s247_s28, %s394_s0 }
  0x16   :  { %p253_p10 = pnand %p251_p9, %p248_p8 }
  0x18   :  { %256 = shalt.err (!%p253_p10)
}
  0x19   :  { %s257_s6 = scalar_lea.vmem %s18_s15, 64  ;;  %p262_p12 = scmp.lt.s32.totalorder %s18_s15, %s18_s15 }
  0x1a   :  { %p258_p11 = scmp.ne.s32.totalorder %s18_s15, %s257_s6  ;;  %p263_p13 = scmp.lt.s32.totalorder %s257_s6, %s257_s6 }
  0x1c   :  { %p264_p0 = por %p263_p13, %p262_p12 }
  0x1e   :  { %p265_p1 = pnand %p264_p0, %p258_p11 }
  0x20   :  { %268 = shalt.err (!%p265_p1)
}
  0x21   :  { %20 = dma.hbm_to_vmem [thread:$0]  %s394_s0, 64, %s18_s15, [#allocation3]  }
  0x22   :  { %s321_s8 = smov [#allocation7]   ;;  %s269_s12 = scalar_lea.hbm %s396_s2, 768 }
  0x23   :  { %s36_s9 = sshll.u32 %s321_s8, 4  ;;  %p270_p2 = scmp.ne.s32.totalorder %s396_s2, %s269_s12  ;;  %s37_s9 = int_to_ptr.vmem [resolvable:$true] %s36_s9 }
  0x24   :  { %p273_p3 = scmp.lt.u32.totalorder %s269_s12, %s396_s2 }
  0x26   :  { %p275_p4 = pnand %p273_p3, %p270_p2 }
  0x28   :  { %278 = shalt.err (!%p275_p4)
}
  0x29   :  { %s279_s18 = scalar_lea.vmem %s37_s9, 768  ;;  %p284_p6 = scmp.lt.s32.totalorder %s37_s9, %s37_s9 }
  0x2a   :  { %p280_p5 = scmp.ne.s32.totalorder %s37_s9, %s279_s18  ;;  %p285_p7 = scmp.lt.s32.totalorder %s279_s18, %s279_s18 }
  0x2c   :  { %p286_p8 = por %p285_p7, %p284_p6 }
  0x2e   :  { %p287_p9 = pnand %p286_p8, %p280_p5 }
  0x30   :  { %290 = shalt.err (!%p287_p9)
}
  0x31   :  { %s322_s0 = smov 128   ;;  %s323_s15 = smov 8  }
  0x32   :  { %42 = dma.hbm_to_vmem [thread:$0]  %s396_s2, 768, %s37_s9, [#allocation6], %s322_s0, %s322_s0, %s323_s15  }
  0x33   :  { %313 = dma.done.wait [#allocation3], 64  }
  0x34   :  { %314 = vsyncadd [#allocation3], 4294967232 }
  0x35   :  { %315 = dma.done.wait [#allocation6], 832  }
  0x36   :  { %316 = vsyncadd [#allocation6], 4294966464  ;;  %v324_v0 = vmov 0   ;;  %v216_v1 = vld [vmem:[#allocation7 + $0x4] ss:$8 sps:$4 sm:$0xff]   ;;  %vm136_vm0 = vcmask 130048  }
  0x37   :  { %172 = vmatprep.mubr.bf16.mxu1 %v324_v0  ;;  %116 = vmatprep.mubr.bf16.mxu0 %v324_v0  ;;  %v218_v2 = vld [vmem:[#allocation7] ss:$8 sps:$4 sm:$0xff]   ;;  %v219_v3 = vld [vmem:[#allocation7 + $0x24] ss:$8 sps:$4 sm:$0xff]   ;;  %v222_v5 = vld [vmem:[#allocation7 + $0x14] ss:$8 sps:$4 sm:$0xff]  }
  0x38   :  { %84 = vmatprep.subr.bf16.mxu0 %v216_v1  ;;  %v221_v4 = vld [vmem:[#allocation7 + $0x20] ss:$8 sps:$4 sm:$0xff]   ;;  %v224_v6 = vld [vmem:[#allocation7 + $0x10] ss:$8 sps:$4 sm:$0xff]   ;;  %140 = vmatprep.subr.bf16.mxu1 %v219_v3  ;;  %v125_v7 = vld [vmem:[#allocation5] sm:$0xf] }
  0x39   :  { %85 = vmatpush1.bf16.msra.mxu0 %v218_v2  ;;  %141 = vmatpush1.bf16.msra.mxu1 %v221_v4  ;;  %v59_v8 = vld [vmem:[#allocation2] sm:$0xf]  ;;  %vm80_vm1 = vcmask 261120   ;;  %s325_s2 = smov [#allocation8]  }
  0x3a   :  { %86 = vmatprep.subr.bf16.mxu0 %v222_v5  ;;  %s191_s21 = sshll.u32 %s325_s2, 4  ;;  %s192_s21 = int_to_ptr.vmem [resolvable:$true] %s191_s21 }
  0x3b   :  { %s291_s22 = scalar_lea.vmem %s192_s21, 256  ;;  %p296_p11 = scmp.lt.s32.totalorder %s192_s21, %s192_s21 }
  0x3c   :  { %208 = vmatmul.mubr.msk.bf16.vlgmr.msra.gmra.mrb[0].mxu1 %vm136_vm0, %v125_v7  ;;  %p292_p10 = scmp.ne.s32.totalorder %s192_s21, %s291_s22  ;;  %p297_p12 = scmp.lt.s32.totalorder %s291_s22, %s291_s22 }
  0x3d   :  { %87 = vmatpush1.bf16.msra.mxu0 %v224_v6 }
  0x3e   :  { %p298_p13 = por %p297_p12, %p296_p11 }
  0x40   :  { %205 = vmatmul.mubr.msk.bf16.vlgmr.msra.gmra.mrb[0].mxu0 %vm80_vm1, %v59_v8  ;;  %p299_p0 = pnand %p298_p13, %p292_p10 }
 0x10f   :  { %v174_v9 = vpop.f32.mrb[0].mxu1 }
 0x110   :  { %v176_v10 = vpop.f32.mrb[1].mxu1 }
 0x111   :  { %v178_v11 = vpop.f32.mrb[2].mxu1 }
 0x112   :  { %v179_v14 = vpop.f32.mrb[3].mxu1 }
 0x113   :  { %v118_v12 = vpop.f32.mrb[0].mxu0 }
 0x114   :  { %v181_v13 = vmul.f32 %v174_v9, %v118_v12  ;;  %v120_v15 = vpop.f32.mrb[1].mxu0 }
 0x115   :  { %v182_v16 = vmul.f32 %v176_v10, %v120_v15  ;;  %v122_v17 = vpop.f32.mrb[2].mxu0 }
 0x116   :  { %183 = vst [vmem:[#allocation8] sm:$0xff] %v181_v13  ;;  %v123_v18 = vpop.f32.mrb[3].mxu0 }
 0x117   :  { %184 = vst [vmem:[#allocation8 + $0x8] sm:$0xff] %v182_v16 }
 0x118   :  { %302 = shalt.err (!%p299_p0)
}
 0x119   :  { %s303_s25 = scalar_lea.hbm %s397_s3, 256 }
 0x11a   :  { %p304_p1 = scmp.ne.s32.totalorder %s397_s3, %s303_s25  ;;  %p307_p2 = scmp.lt.u32.totalorder %s303_s25, %s397_s3 }
 0x11c   :  { %p309_p3 = pnand %p307_p2, %p304_p1 }
 0x11e   :  { %312 = shalt.err (!%p309_p3)
}
 0x11f   :  { %194 = dma.vmem_to_hbm [thread:$0]  %s192_s21, 256, %s397_s3, [#allocation4]  }
 0x120   :  { %317 = dma.done.wait [#allocation4], 256  }
 0x121   :  { %318 = vsyncadd [#allocation4], 4294967040 }
 0x122   :  { %198 = vsyncpa [#allocation3], 1 }
 0x123   :  { %199 = vsyncpa [#allocation6], 1 }
 0x124   :  { %200 = vsyncpa [#allocation4], 1 }

</bundles_post_ra>
